<compile_context>
chip_gen: v7x
topology: tpu7x:2x2x1
jax: 0.10.0
libtpu: 0.0.40
codegen_flags: <defaults>
</compile_context>

<pallas_src>
import functools

import jax
import jax.numpy as jnp
from jax.experimental import pallas as pl
from jax.experimental.pallas import tpu as pltpu

MAX_TP = 2048   # pixels (lanes) per pass-1 grid step
MAX_TR = 512    # rows of 128 pixels per pass-2 grid step


# ----------------------------------------------------------------------------
# Pass 1: per-pixel softmax statistics.
#   logits block (C, TP), labels block (1, TP)  ->
#     prob (1, TP): softmax prob of the true class; 2.0 for ignored/padded
#     ce   (1, TP): -log softmax at the true class, pre-masked to 0 if ignored
# ----------------------------------------------------------------------------
def _pixel_kernel(logit_ref, label_ref, prob_ref, ce_ref, *, ignore_label):
    logits = logit_ref[...].astype(jnp.float32)      # (C, TP)
    label = label_ref[...]                           # (1, TP) int32

    valid = label != ignore_label                    # padded columns read "ignore"
    safe_label = jnp.where(valid, label, 0)

    cls = jax.lax.broadcasted_iota(jnp.int32, logits.shape, 0)   # (C, TP)
    sel = cls == safe_label

    m = jnp.max(logits, axis=0, keepdims=True)       # (1, TP)
    e = jnp.exp(logits - m)
    s = jnp.sum(e, axis=0, keepdims=True)

    true_logit = jnp.sum(jnp.where(sel, logits, 0.0), axis=0, keepdims=True)
    e_true = jnp.sum(jnp.where(sel, e, 0.0), axis=0, keepdims=True)

    prob_true = e_true / s                           # softmax prob at label (no extra exp)
    ce = (jnp.log(s) + m) - true_logit               # -log softmax at label

    # selects (not arithmetic) so garbage in ragged tail columns never leaks
    prob_ref[...] = jnp.where(valid, prob_true, 2.0)
    ce_ref[...] = jnp.where(valid, ce, 0.0)


def _compute_pixel_stats(logit3, label3, *, tp, hw_pad, ignore_label):
    N, C, _ = logit3.shape
    grid = (N, hw_pad // tp)
    kernel = functools.partial(_pixel_kernel, ignore_label=ignore_label)
    return pl.pallas_call(
        kernel,
        out_shape=(
            jax.ShapeDtypeStruct((N, 1, hw_pad), jnp.float32),
            jax.ShapeDtypeStruct((N, 1, hw_pad), jnp.float32),
        ),
        grid_spec=pltpu.PrefetchScalarGridSpec(
            num_scalar_prefetch=0,
            grid=grid,
            in_specs=[
                pl.BlockSpec((None, C, tp), lambda n, j: (n, 0, j)),
                pl.BlockSpec((None, 1, tp), lambda n, j: (n, 0, j)),
            ],
            out_specs=(
                pl.BlockSpec((None, 1, tp), lambda n, j: (n, 0, j)),
                pl.BlockSpec((None, 1, tp), lambda n, j: (n, 0, j)),
            ),
        ),
        compiler_params=pltpu.CompilerParams(
            dimension_semantics=("parallel", "parallel"),
            vmem_limit_bytes=32 * 1024 * 1024,
        ),
    )(logit3, label3)


# ----------------------------------------------------------------------------
# Pass 2: masked partial sums. Each grid step reduces a dense (TR, 128) block of
# prob / masked-CE to (8, 128) per-block partials (pure VPU adds); the wrapper
# finishes the tiny reduction.
# ----------------------------------------------------------------------------
def _reduce_kernel(thr_ref, prob_ref, ce_ref,
                   ce_sum_ref, valid_sum_ref, ce_kept_sum_ref, kept_sum_ref,
                   *, tr, total_rows):
    thr = thr_ref[0]
    prob = prob_ref[...]                             # (TR, 128)
    ce = ce_ref[...]                                 # (TR, 128)

    if total_rows % tr != 0:                         # ragged tail: mask garbage rows
        rows = pl.program_id(0) * tr + jax.lax.broadcasted_iota(
            jnp.int32, prob.shape, 0)
        in_range = rows < total_rows
        prob = jnp.where(in_range, prob, 2.0)
        ce = jnp.where(in_range, ce, 0.0)

    validf = (prob < 1.5).astype(jnp.float32)        # invalid/padded encoded as 2.0
    keptb = prob < thr
    keptf = validf * keptb.astype(jnp.float32)
    ce_kept = jnp.where(keptb, ce, 0.0)              # ce already valid-masked

    def fold(x):                                     # (TR,128) -> (8,128), VPU adds
        return jnp.sum(x.reshape(tr // 8, 8, 128), axis=0)

    ce_sum_ref[...] = fold(ce)
    valid_sum_ref[...] = fold(validf)
    ce_kept_sum_ref[...] = fold(ce_kept)
    kept_sum_ref[...] = fold(keptf)


def _partial_sums(thr, prob2, ce2, *, tr):
    rows8 = prob2.shape[0]
    jb = pl.cdiv(rows8, tr)
    kernel = functools.partial(_reduce_kernel, tr=tr, total_rows=rows8)
    out = jax.ShapeDtypeStruct((jb * 8, 128), jnp.float32)
    part_spec = pl.BlockSpec((8, 128), lambda i: (i, 0))
    return pl.pallas_call(
        kernel,
        out_shape=(out, out, out, out),
        grid_spec=pltpu.PrefetchScalarGridSpec(
            num_scalar_prefetch=0,
            grid=(jb,),
            in_specs=[
                pl.BlockSpec(memory_space=pltpu.MemorySpace.SMEM),
                pl.BlockSpec((tr, 128), lambda i: (i, 0)),
                pl.BlockSpec((tr, 128), lambda i: (i, 0)),
            ],
            out_specs=(part_spec, part_spec, part_spec, part_spec),
        ),
        compiler_params=pltpu.CompilerParams(
            dimension_semantics=("parallel",)),
    )(thr, prob2, ce2)


# ----------------------------------------------------------------------------
# Wrapper reproducing OhemCrossEntropyLoss.forward
# ----------------------------------------------------------------------------
def ohem_cross_entropy_loss(logit, label, *, thresh=0.7, min_kept=10000,
                            ignore_label=255, eps=1e-5):
    N, C, H, W = logit.shape
    hw = H * W
    p_real = N * hw

    # Pixel tile: multiple of 128, large enough to amortize pipeline overhead,
    # capped so double-buffered (C, TP) f32 blocks fit v5e's 16 MiB scoped VMEM.
    tp_cap = max(128, ((4 * 1024 * 1024) // (4 * C)) // 128 * 128)
    tp = min(MAX_TP, tp_cap, pl.cdiv(hw, 128) * 128)
    hw_pad = pl.cdiv(hw, tp) * tp

    logit3 = logit.reshape(N, C, hw)                 # free reshape, no transpose
    if hw % 128 != 0:
        # TODO(synk): ragged lane tails need HW % 128 == 0; rare fallback copy.
        logit3 = jnp.pad(logit3, ((0, 0), (0, 0), (0, hw_pad - hw)))
    label3 = label.astype(jnp.int32).reshape(N, 1, hw)
    label3 = jnp.pad(label3, ((0, 0), (0, 0), (0, hw_pad - hw)),
                     constant_values=ignore_label)   # cheap: int row only

    prob, ce = _compute_pixel_stats(logit3, label3, tp=tp, hw_pad=hw_pad,
                                    ignore_label=ignore_label)

    # OHEM threshold: k-th smallest true-class prob. Ignored/padded pixels are
    # encoded as 2.0 so they sort past every valid probability.
    # TODO(synk): exact k-th order statistic stays in XLA (lax.top_k); a Pallas
    # histogram/prefix-sum selection kernel could replace it for huge images.
    if min_kept > 0:
        k = min(p_real, min_kept)
        kth = -jax.lax.top_k(-prob.reshape(-1), k)[0][k - 1]
        threshold = jnp.maximum(kth, jnp.float32(thresh))
    else:
        threshold = jnp.float32(thresh)
    thr = jnp.reshape(threshold, (1,)).astype(jnp.float32)

    # Dense 2-D (rows of 128 pixels) view for the reduction pass.
    rows = (N * hw_pad) // 128
    rows8 = pl.cdiv(rows, 8) * 8
    prob2 = prob.reshape(rows, 128)
    ce2 = ce.reshape(rows, 128)
    if rows8 != rows:                                # only tiny inputs hit this
        prob2 = jnp.pad(prob2, ((0, rows8 - rows), (0, 0)), constant_values=2.0)
        ce2 = jnp.pad(ce2, ((0, rows8 - rows), (0, 0)))
    tr = min(MAX_TR, rows8)

    parts = _partial_sums(thr, prob2, ce2, tr=tr)
    sum_ce_all, sum_valid, sum_ce_kept, sum_kept = [jnp.sum(p) for p in parts]

    if min_kept > 0:
        apply_ohem = sum_valid > jnp.float32(min_kept)   # min_kept < num_valid
        loss_sum = jnp.where(apply_ohem, sum_ce_kept, sum_ce_all)
        mask_sum = jnp.where(apply_ohem, sum_kept, sum_valid)
    else:
        loss_sum, mask_sum = sum_ce_all, sum_valid

    loss_mean = loss_sum / p_real                    # loss.mean()
    mask_mean = mask_sum / p_real                    # mask.mean()
    return loss_mean / (mask_mean + eps)


# ----------------------------------------------------------------------------
# Pure-JAX reference (mirrors the PyTorch forward) for a sanity check.
# ----------------------------------------------------------------------------
def _ref_ohem(logit, label, *, thresh, min_kept, ignore_label, eps=1e-5):
    N, C, H, W = logit.shape
    lab = label.reshape(-1).astype(jnp.int32)
    mask = (lab != ignore_label).astype(jnp.int32)
    num_valid = mask.sum()
    lab = lab * mask

    prob = jax.nn.softmax(logit, axis=1).transpose(1, 0, 2, 3).reshape(C, -1)
    prob = prob + (1 - mask)
    idx = jnp.arange(lab.shape[0])
    prob_true = prob[lab, idx]

    threshold = jnp.float32(thresh)
    if min_kept > 0:
        k = min(lab.shape[0], min_kept) - 1
        kth = jnp.sort(prob_true)[k]
        threshold = jnp.where(kth > thresh, kth, threshold)
    kept = (prob_true < threshold).astype(jnp.int32)
    kept = jnp.where(jnp.logical_and(min_kept < num_valid, num_valid > 0), kept, 1)
    final_mask = (mask * kept).astype(jnp.float32)

    logp = jax.nn.log_softmax(logit, axis=1).transpose(1, 0, 2, 3).reshape(C, -1)
    ce = -logp[lab, idx]
    loss = ce * final_mask
    return loss.mean() / (final_mask.mean() + eps)


if __name__ == "__main__":
    key = jax.random.PRNGKey(0)
    N, C, H, W = 2, 4, 16, 16
    k1, k2, k3 = jax.random.split(key, 3)

    logit = jax.random.normal(k1, (N, C, H, W), dtype=jnp.float32)
    label = jax.random.randint(k2, (N, H, W), 0, C, dtype=jnp.int32)
    ignore = jax.random.uniform(k3, (N, H, W)) < 0.12
    label = jnp.where(ignore, 255, label)

    # min_kept=100 so the OHEM branch triggers at this small spatial size.
    loss = ohem_cross_entropy_loss(logit, label, thresh=0.7, min_kept=100,
                                   ignore_label=255)
    loss = jax.block_until_ready(loss)

    ref = _ref_ohem(logit, label, thresh=0.7, min_kept=100, ignore_label=255)
    assert jnp.isfinite(loss), "loss is not finite"
    assert jnp.allclose(loss, ref, rtol=1e-5, atol=1e-5), (loss, ref)

    print("KERNEL_OK")
</pallas_src>

<mosaic_0001>
module attributes {stable_mosaic.version = 11 : i64} {
  func.func @_pixel_kernel(%arg0: i32, %arg1: i32, %arg2: memref<1x4x256xf32, #tpu.memory_space<vmem>>, %arg3: memref<1x1x256xi32, #tpu.memory_space<vmem>>, %arg4: memref<1x1x256xf32, #tpu.memory_space<vmem>>, %arg5: memref<1x1x256xf32, #tpu.memory_space<vmem>>) attributes {dimension_semantics = [#tpu.dimension_semantics<parallel>, #tpu.dimension_semantics<parallel>], iteration_bounds = array<i64: 2, 1>, scalar_prefetch = 0 : i64, scratch_operands = 0 : i64, tpu.core_type = #tpu.core_type<tc>, window_params = [{transform_indices = @transform_0, window_bounds = array<i64: 1, 4, 256>}, {transform_indices = @transform_1, window_bounds = array<i64: 1, 1, 256>}, {transform_indices = @transform_2, window_bounds = array<i64: 1, 1, 256>}, {transform_indices = @transform_3, window_bounds = array<i64: 1, 1, 256>}]} {
    %c0 = arith.constant 0 : index
    %c0_0 = arith.constant 0 : index
    %c0_1 = arith.constant 0 : index
    %0 = vector.load %arg2[%c0, %c0_0, %c0_1] : memref<1x4x256xf32, #tpu.memory_space<vmem>>, vector<1x4x256xf32>
    %1 = vector.shape_cast %0 : vector<1x4x256xf32> to vector<4x256xf32>
    %c0_2 = arith.constant 0 : index
    %c0_3 = arith.constant 0 : index
    %c0_4 = arith.constant 0 : index
    %2 = vector.load %arg3[%c0_2, %c0_3, %c0_4] : memref<1x1x256xi32, #tpu.memory_space<vmem>>, vector<1x1x256xi32>
    %3 = vector.shape_cast %2 : vector<1x1x256xi32> to vector<1x256xi32>
    %c255_i32 = arith.constant 255 : i32
    %4 = vector.broadcast %c255_i32 : i32 to vector<1x256xi32>
    %5 = arith.cmpi ne, %3, %4 : vector<1x256xi32>
    %c0_i32 = arith.constant 0 : i32
    %6 = vector.broadcast %c0_i32 : i32 to vector<1x256xi32>
    %7 = arith.select %5, %3, %6 : vector<1x256xi1>, vector<1x256xi32>
    %8 = tpu.iota {dimensions = array<i32: 0>} : vector<4x256xi32>
    %9 = vector.broadcast %7 : vector<1x256xi32> to vector<4x256xi32>
    %10 = arith.cmpi eq, %8, %9 : vector<4x256xi32>
    %cst = arith.constant dense<0xFF800000> : vector<256xf32>
    %11 = vector.multi_reduction <maximumf>, %1, %cst [0] : vector<4x256xf32> to vector<256xf32>
    %12 = vector.shape_cast %11 : vector<256xf32> to vector<1x256xf32>
    %13 = vector.broadcast %12 : vector<1x256xf32> to vector<4x256xf32>
    %14 = arith.subf %1, %13 : vector<4x256xf32>
    %15 = math.exp %14 : vector<4x256xf32>
    %cst_5 = arith.constant dense<0.000000e+00> : vector<256xf32>
    %16 = vector.multi_reduction <add>, %15, %cst_5 [0] : vector<4x256xf32> to vector<256xf32>
    %17 = vector.shape_cast %16 : vector<256xf32> to vector<1x256xf32>
    %cst_6 = arith.constant 0.000000e+00 : f32
    %18 = vector.broadcast %cst_6 : f32 to vector<4x256xf32>
    %19 = arith.select %10, %1, %18 : vector<4x256xi1>, vector<4x256xf32>
    %cst_7 = arith.constant dense<0.000000e+00> : vector<256xf32>
    %20 = vector.multi_reduction <add>, %19, %cst_7 [0] : vector<4x256xf32> to vector<256xf32>
    %21 = vector.shape_cast %20 : vector<256xf32> to vector<1x256xf32>
    %cst_8 = arith.constant 0.000000e+00 : f32
    %22 = vector.broadcast %cst_8 : f32 to vector<4x256xf32>
    %23 = arith.select %10, %15, %22 : vector<4x256xi1>, vector<4x256xf32>
    %cst_9 = arith.constant dense<0.000000e+00> : vector<256xf32>
    %24 = vector.multi_reduction <add>, %23, %cst_9 [0] : vector<4x256xf32> to vector<256xf32>
    %25 = vector.shape_cast %24 : vector<256xf32> to vector<1x256xf32>
    %26 = arith.divf %25, %17 : vector<1x256xf32>
    %27 = math.log %17 : vector<1x256xf32>
    %28 = arith.addf %27, %12 : vector<1x256xf32>
    %29 = arith.subf %28, %21 : vector<1x256xf32>
    %cst_10 = arith.constant 2.000000e+00 : f32
    %30 = vector.broadcast %cst_10 : f32 to vector<1x256xf32>
    %31 = arith.select %5, %26, %30 : vector<1x256xi1>, vector<1x256xf32>
    %c0_11 = arith.constant 0 : index
    %c0_12 = arith.constant 0 : index
    %c0_13 = arith.constant 0 : index
    %32 = vector.load %arg4[%c0_11, %c0_12, %c0_13] : memref<1x1x256xf32, #tpu.memory_space<vmem>>, vector<1x1x256xf32>
    %33 = vector.shape_cast %32 : vector<1x1x256xf32> to vector<1x256xf32>
    %34 = vector.shape_cast %31 : vector<1x256xf32> to vector<1x1x256xf32>
    tpu.vector_store %arg4[%c0_11, %c0_12, %c0_13], %34 {strides = array<i32>} : memref<1x1x256xf32, #tpu.memory_space<vmem>>, vector<1x1x256xf32>,
    %cst_14 = arith.constant 0.000000e+00 : f32
    %35 = vector.broadcast %cst_14 : f32 to vector<1x256xf32>
    %36 = arith.select %5, %29, %35 : vector<1x256xi1>, vector<1x256xf32>
    %c0_15 = arith.constant 0 : index
    %c0_16 = arith.constant 0 : index
    %c0_17 = arith.constant 0 : index
    %37 = vector.load %arg5[%c0_15, %c0_16, %c0_17] : memref<1x1x256xf32, #tpu.memory_space<vmem>>, vector<1x1x256xf32>
    %38 = vector.shape_cast %37 : vector<1x1x256xf32> to vector<1x256xf32>
    %39 = vector.shape_cast %36 : vector<1x256xf32> to vector<1x1x256xf32>
    tpu.vector_store %arg5[%c0_15, %c0_16, %c0_17], %39 {strides = array<i32>} : memref<1x1x256xf32, #tpu.memory_space<vmem>>, vector<1x1x256xf32>,
    return
  }
  func.func @transform_0(%arg0: i32, %arg1: i32) -> (i32, i32, i32) {
    %c0_i32 = arith.constant 0 : i32
    %c0_i32_0 = arith.constant 0 : i32
    return %arg0, %c0_i32, %arg1 : i32, i32, i32
  }
  func.func @transform_1(%arg0: i32, %arg1: i32) -> (i32, i32, i32) {
    %c0_i32 = arith.constant 0 : i32
    %c0_i32_0 = arith.constant 0 : i32
    return %arg0, %c0_i32, %arg1 : i32, i32, i32
  }
  func.func @transform_2(%arg0: i32, %arg1: i32) -> (i32, i32, i32) {
    %c0_i32 = arith.constant 0 : i32
    %c0_i32_0 = arith.constant 0 : i32
    return %arg0, %c0_i32, %arg1 : i32, i32, i32
  }
  func.func @transform_3(%arg0: i32, %arg1: i32) -> (i32, i32, i32) {
    %c0_i32 = arith.constant 0 : i32
    %c0_i32_0 = arith.constant 0 : i32
    return %arg0, %c0_i32, %arg1 : i32, i32, i32
  }
}

</mosaic_0001>

<bundles_post_ra>
// kernel: tpu_custom_call.1
= control target key start
LH: loop header
LB: loop body
LE: loop exit
PB: predicated region body
PF: predicated region fallthrough
CT: control target
= control target key end

     0   :  { %9 = vsyncpa [#allocation3], 0  ;;  %s1212_s0 = inlined_call_operand.hbm [shape: f32[2,4,256], index: 0, kind: input, shape index: {}]   ;;  %s1213_s1 = inlined_call_operand.hbm [shape: s32[2,1,256], index: 1, kind: input, shape index: {}]   ;;  %s1214_s2 = inlined_call_operand.hbm [shape: f32[2,1,256], index: 2, kind: output, shape index: {0}]   ;;  %s1215_s3 = inlined_call_operand.hbm [shape: f32[2,1,256], index: 3, kind: output, shape index: {1}]  }
   0x1   :  { %11 = vsyncpa [#allocation3 + $0x1], 0 }
   0x2   :  { %12 = vsyncpa [#allocation6], 0 }
   0x3   :  { %14 = vsyncpa [#allocation6 + $0x1], 0 }
   0x4   :  { %15 = vsyncpa [#allocation4], 0 }
   0x5   :  { %17 = vsyncpa [#allocation4 + $0x1], 0 }
   0x6   :  { %18 = vsyncpa [#allocation9], 0 }
   0x7   :  { %20 = vsyncpa [#allocation9 + $0x1], 0  ;;  %s909_s12 = smov 0   ;;  %s911_s13 = smov 0  }
   0x8   :  { %s913_s14 = smov 0   ;;  %s915_s15 = smov 0  }
   0x9   :  { %s917_s16 = smov 0   ;;  %s919_s17 = smov 0  }
   0xa LB: > { %s593_s18 = sadd.s32 4294967295, %s882_s17   ;;  %s594_s19 = sadd.s32 4294967294, %s882_s17   ;;  %s882_s17 = sphi %s919_s17, %s26_s17   ;;  %s878_s16 = sphi %s917_s16, %s1237_s16   ;;  %s874_s15 = sphi %s915_s15, %s1236_s15   ;;  %s870_s14 = sphi %s913_s14, %s1235_s14   ;;  %s866_s13 = sphi %s911_s13, %s1234_s13   ;;  %s862_s12 = sphi %s909_s12, %s1233_s12  }
   0xb   : > { %s38_s20 = sadd.s32 1, %s878_s16  ;;  %s47_s21 = sadd.s32 1, %s870_s14 }
   0xc   : > { %p40_p0 = scmp.ge.s32.totalorder %s38_s20, 2  ;;  %p54_p1 = scmp.ne.s32.totalorder %s870_s14, %s866_s13 }
   0xd   : > { %p55_p2 = scmp.eq.s32.totalorder %s882_s17, 0  ;;  %p60_p3 = scmp.ne.s32.totalorder %s866_s13, %s862_s12 }
   0xe   : > { %s1239_s20 = smov (%p40_p0, %s38_s20), 0  ;;  %p61_p5 = scmp.eq.s32.totalorder %s593_s18, 0 }
   0xf   : > { %p950_p4 = por %p55_p2, %p54_p1  ;;  %s42_s23 = ssub.s32 %s878_s16, %s1239_s20 }
  0x10   : > { %p114_p6 = scmp.eq.s32.totalorder %s593_s18, 1  ;;  %p45_p7 = scmp.eq.s32.totalorder %s42_s23, 0 }
  0x11   : > { %p956_p8 = por %p61_p5, %p60_p3  ;;  %p120_p10 = scmp.eq.s32.totalorder %s594_s19, 1 }
  0x12   : > { %p960_p9 = por %p114_p6, %p54_p1  ;;  %p642_p13 = scmp.lt.s32.totalorder %s882_s17, 2 }
  0x13   : > { %s1219_s24 = scalar_select %p956_p8, 1, 0 }
  0x14   : > { %s1220_s25 = scalar_select %p960_p9, 1, 0 }
  0x15   : > { %s965_s26 = scalar_select %p45_p7, %s870_s14, %s47_s21  }
  0x16   : > { %p967_p11 = por %p120_p10, %p60_p3  ;;  %s974_s28 = sand.u32 1, %s870_s14  }
  0x17   : > { %s597_s29 = sshll.u32 %s974_s28, 3  ;;  %s616_s30 = sshll.u32 %s878_s16, 7 }
  0x18   : > { %s1221_s27 = scalar_select %p967_p11, 1, 0 }
  0x19   : > { %s981_s6 = scalar_lea.hbm %s1212_s0, %s616_s30  ;;  %s172_s7 = scalar_lea.vmem [#allocation2], %s597_s29 }
  0x1a   : > { %s182_s8 = sshll.u32 %s172_s7, 4  ;;  %p987_p0 = pnand %p642_p13, %p950_p4  ;;  %s983_s8 = int_to_ptr.vmem [resolvable:$true] %s182_s8 }
  0x1b   : > { %s169_s10 = scalar_lea.sflag [#allocation3], %s974_s28  ;;  %s704_s11 = scalar_lea.hbm %s981_s6, 128 }
  0x1c   : > { %p705_p3 = scmp.ne.s32.totalorder %s981_s6, %s704_s11  ;;  %p706_p5 = pneg %p987_p0 }
  0x1d   : > { %s709_s21 = scalar_lea.hbm %s1212_s0, 256  ;;  %p710_p4 = scmp.lt.u32.totalorder %s981_s6, %s1212_s0 }
  0x1e   : > { %p707_p6 = pnand %p706_p5, %p705_p3  ;;  %p711_p10 = scmp.lt.u32.totalorder %s709_s21, %s704_s11 }
  0x1f   : > { %p713_p12 = scmp.lt.u32.totalorder %s704_s11, %s981_s6 }
  0x20   : > { %p708_p7 = pneg %p707_p6  ;;  %p712_p13 = por %p711_p10, %p710_p4 }
  0x22   : > { %p714_p1 = por %p713_p12, %p712_p13 }
  0x24   : > { %p715_p2 = pnand %p714_p1, %p708_p7 }
  0x26   : > { %718 = shalt.err (!%p715_p2)
}
  0x27   : > { %s719_s29 = scalar_lea.vmem %s983_s8, 128  ;;  %s884_s30 = smov [#allocation2]  }
  0x28   : > { %p720_p3 = scmp.ne.s32.totalorder %s983_s8, %s719_s29  ;;  %s724_s4 = sshll.u32 %s884_s30, 4  ;;  %s725_s4 = int_to_ptr.vmem [resolvable:$false] %s724_s4 }
  0x29   : > { %s726_s5 = scalar_lea.vmem %s725_s4, 256  ;;  %p727_p9 = scmp.lt.s32.totalorder %s983_s8, %s725_s4 }
  0x2a   : > { %p722_p6 = pnand %p720_p3, %p706_p5  ;;  %p728_p4 = scmp.lt.s32.totalorder %s726_s5, %s719_s29 }
  0x2c   : > { %p723_p11 = pneg %p722_p6  ;;  %p729_p10 = por %p728_p4, %p727_p9 }
  0x2e   : > { %p730_p12 = pnand %p729_p10, %p723_p11 }
  0x30   : > { %733 = shalt.err (!%p730_p12)
}
  0x31   : > { %631 = dma.hbm_to_vmem [thread:$0]  (!%p987_p0), %s981_s6, 128, %s983_s8, %s169_s10  }
  0x32   : > { %p1223_p1 = scmp.lt.s32.totalorder %s882_s17, 3  ;;  %p1224_p2 = scmp.ge.s32.totalorder %s882_s17, 1 }
  0x33   : > { %s600_s11 = sshll.u32 %s974_s28, 1  ;;  %s617_s18 = sshll.u32 %s878_s16, 5 }
  0x34   : > { %p1023_p7 = pnand %p1224_p2, %p1223_p1  ;;  %s1032_s22 = scalar_lea.hbm %s1213_s1, %s617_s18 }
  0x35   : > { %s193_s23 = scalar_lea.vmem [#allocation5], %s600_s11  ;;  %s190_s6 = scalar_lea.sflag [#allocation6], %s974_s28 }
  0x36   : > { %s1225_s7 = scalar_select %p1023_p7, 1, 0 }
  0x37   : > { %s203_s29 = sshll.u32 %s193_s23, 4  ;;  %s734_s8 = scalar_lea.hbm %s1032_s22, 32  ;;  %s204_s29 = int_to_ptr.vmem [resolvable:$true] %s203_s29 }
  0x38   : > { %p735_p9 = scmp.ne.s32.totalorder %s1032_s22, %s734_s8  ;;  %s739_s4 = scalar_lea.hbm %s1213_s1, 64 }
  0x39   : > { %p740_p3 = scmp.lt.u32.totalorder %s1032_s22, %s1213_s1  ;;  %p741_p6 = scmp.lt.u32.totalorder %s739_s4, %s734_s8 }
  0x3a   : > { %p737_p11 = pnand %p735_p9, %p706_p5  ;;  %p743_p10 = scmp.lt.u32.totalorder %s734_s8, %s1032_s22 }
  0x3b   : > { %p742_p4 = por %p741_p6, %p740_p3 }
  0x3c   : > { %p738_p13 = pneg %p737_p11 }
  0x3d   : > { %p744_p12 = por %p743_p10, %p742_p4 }
  0x3f   : > { %p745_p1 = pnand %p744_p12, %p738_p13 }
  0x41   : > { %748 = shalt.err (!%p745_p1)
}
  0x42   : > { %s749_s28 = scalar_lea.vmem %s204_s29, 32  ;;  %s885_s11 = smov [#allocation5]  }
  0x43   : > { %p750_p2 = scmp.ne.s32.totalorder %s204_s29, %s749_s28  ;;  %s754_s19 = sshll.u32 %s885_s11, 4  ;;  %s755_s19 = int_to_ptr.vmem [resolvable:$false] %s754_s19 }
  0x44   : > { %s756_s21 = scalar_lea.vmem %s755_s19, 64  ;;  %p757_p8 = scmp.lt.s32.totalorder %s204_s29, %s755_s19 }
  0x45   : > { %p752_p9 = pnand %p750_p2, %p706_p5  ;;  %p758_p7 = scmp.lt.s32.totalorder %s756_s21, %s749_s28 }
  0x47   : > { %p753_p11 = pneg %p752_p9  ;;  %p759_p3 = por %p758_p7, %p757_p8 }
  0x49   : > { %p760_p6 = pnand %p759_p3, %p753_p11 }
  0x4b   : > { %763 = shalt.err (!%p760_p6)
}
  0x4c   : > { %634 = dma.hbm_to_vmem [thread:$0]  (!%p987_p0), %s1032_s22, 32, %s204_s29, %s190_s6  }
  0x4d   : > { %p1226_p13 = scmp.ne.s32.totalorder %s1225_s7, 0 }
  0x4e   : > { %s1057_s23 = sand.u32 (!%p1226_p13), 1, %s866_s13   ;;  %p1227_p5 = scmp.ne.s32.totalorder (!%p1226_p13), %s1219_s24, 0 }
  0x4f   : > { %212 = sbr.rel (%p1226_p13) target bundleno = 195 (0xc3), region = 28  ;;  %s604_s8 = sshll.u32 (!%p1226_p13), %s1057_s23, 3 }
  0x50   : > { %s215_s10 = scalar_lea.sflag (!%p1226_p13), [#allocation3], %s1057_s23  ;;  %s218_s30 = scalar_lea.vmem (!%p1226_p13), [#allocation2], %s604_s8 }
  0x56   : > { %845 = dma.done.wait (%p1227_p5), %s215_s10, 128  }
  0x57   : > { %847 = vsyncadd (%p1227_p5), %s215_s10, 4294967168  ;;  %s1066_s9 = sshll.u32 %s1057_s23, 1  ;;  %s224_s7 = scalar_lea.sflag [#allocation6], %s1057_s23 }
  0x58   : > { %s227_s22 = scalar_lea.vmem [#allocation5], %s1066_s9 }
  0x59   : > { %849 = dma.done.wait (%p1227_p5), %s224_s7, 32  }
  0x5a   : > { %851 = vsyncadd (%p1227_p5), %s224_s7, 4294967264  ;;  %vm283_vm0 = vcmask 1043456   ;;  %v264_v0 = vld [vmem:[%s218_s30] sm:$0xff]  ;;  %v268_v15 = vlaneseq  ;;  %v1080_v17 = vld [vmem:[%s227_s22] sm:$0x3]  ;;  %s252_s24 = scalar_lea.vmem [#allocation7], %s1066_s9 }
  0x5b   : > { %v281_v1 = vcombine.high %v264_v0, %v264_v0  ;;  %v284_v2 = vsel %vm283_vm0, %v264_v0, -inf  ;;  %vm266_vm1 = vcmp.ne.s32.totalorder %v1080_v17, 255  ;;  %s432_s29 = sshll.u32 %s252_s24, 4  ;;  %s618_s6 = sshll.u32 %s874_s15, 5  ;;  %s1111_s29 = int_to_ptr.vmem [resolvable:$true] %s432_s29 }
  0x5c   : > { %v285_v3 = vrot.slane %v284_v2, 4  ;;  %v1085_v19 = vshrl.u32 %v268_v15, 7  ;;  %v267_v23 = vsel %vm266_vm1, %v1080_v17, 0  ;;  %vm1107_vm4 = vcmp.lt.s32.totalorder %v268_v15, 256  ;;  %s1118_s18 = scalar_lea.hbm %s1214_s2, %s618_s6  ;;  %s259_s28 = scalar_lea.vmem [#allocation8], %s1066_s9 }
  0x5d   : > { %v291_v4 = vsel %vm283_vm0, %v281_v1, -inf  ;;  %s1125_s11 = sshll.u32 %s259_s28, 4  ;;  %s411_s19 = scalar_lea.sflag [#allocation4], %s1057_s23  ;;  %s1152_s11 = int_to_ptr.vmem [resolvable:$true] %s1125_s11 }
  0x5e   : > { %v286_v5 = vmax.f32 %v284_v2, %v285_v3  ;;  %v292_v6 = vrot.slane %v291_v4, 4  ;;  %v272_v22 = vsub.s32 0, %v1085_v19  ;;  %v276_v24 = vsub.s32 1, %v1085_v19  ;;  %s764_s21 = scalar_lea.vmem %s1111_s29, 32  ;;  %p1230_p0 = scmp.ne.s32.totalorder %s1220_s25, 0 }
  0x5f   : > { %p765_p8 = scmp.ne.s32.totalorder %s1111_s29, %s764_s21  ;;  %s887_s8 = smov [#allocation7]  }
  0x60   : > { %v287_v7 = vrot.slane %v286_v5, 2  ;;  %v293_v8 = vmax.f32 %v291_v4, %v292_v6  ;;  %v273_v25 = vrot.slane %v267_v23, %v272_v22  ;;  %v277_v26 = vrot.slane %v267_v23, %v276_v24  ;;  %s768_s10 = sshll.u32 %s887_s8, 4  ;;  %s769_s10 = int_to_ptr.vmem [resolvable:$false] %s768_s10 }
  0x61   : > { %v886_v4 = vmov 1966171168   ;;  %p766_p7 = pnand %p765_p8, %p1230_p0  ;;  %s770_s30 = scalar_lea.vmem %s769_s10, 64 }
  0x62   : > { %v288_v9 = vmax.f32 %v286_v5, %v287_v7  ;;  %v294_v10 = vrot.slane %v293_v8, 2  ;;  %vm278_vm2 = vcmp.eq.s32.totalorder %v1085_v19, %v273_v25  ;;  %vm279_vm3 = vcmp.eq.s32.totalorder %v1085_v19, %v277_v26  ;;  %p771_p10 = scmp.lt.s32.totalorder %s1111_s29, %s769_s10  ;;  %p772_p12 = scmp.lt.s32.totalorder %s770_s30, %s764_s21 }
  0x63   : > { %v322_v28 = vsel %vm278_vm2, %v264_v0, 0.0  ;;  %v323_v33 = vsel %vm279_vm3, %v281_v1, 0.0  ;;  %v370_v5 = vunpack.c.l.s4 %v886_v4  ;;  %p767_p4 = pneg %p766_p7 }
  0x64   : > { %v289_v11 = vrot.slane %v288_v9, 1  ;;  %v295_v12 = vmax.f32 %v293_v8, %v294_v10  ;;  %v324_v36 = vsel %vm283_vm0, %v322_v28, 0.0  ;;  %v331_v42 = vsel %vm283_vm0, %v323_v33, 0.0  ;;  %p773_p1 = por %p772_p12, %p771_p10 }
  0x65   : > { %v325_v47 = vrot.slane %v324_v36, 4  ;;  %v332_v51 = vrot.slane %v331_v42, 4  ;;  %v371_v10 = vunpack.c.0.s8 %v370_v5 }
  0x66   : > { %v1076_v13 = vmax.f32 %v288_v9, %v289_v11  ;;  %v296_v14 = vrot.slane %v295_v12, 1  ;;  %p774_p2 = pnand %p773_p1, %p767_p4 }
  0x67   : > { %v326_v55 = vadd.f32 %v325_v47, %v324_v36  ;;  %v333_v59 = vadd.f32 %v332_v51, %v331_v42  ;;  %v374_v25 = vsub.s32 %v371_v10, %v1085_v19 }
  0x68   : > { %v1078_v16 = vmax.f32 %v295_v12, %v296_v14 }
  0x69   : > { %v327_v62 = vrot.slane %v326_v55, 2 }
  0x6a   : > { %v300_v18 = vcombine.low %v1076_v13, %v1078_v16 }
  0x6b   : > { %v328_v2 = vadd.f32 %v327_v62, %v326_v55 }
  0x6c   : > { %v302_v20 = vsub.f32 %v264_v0, %v300_v18  ;;  %v334_v0 = vrot.slane %v333_v59, 2 }
  0x6d   : > { %v329_v8 = vrot.slane %v328_v2, 1 }
  0x6e   : > { %v303_v21 = vmul.f32 1.442695, %v302_v20  ;;  %v335_v6 = vadd.f32 %v334_v0, %v333_v59 }
  0x70   : > { %694 = vpow2.f32 %v303_v21  ;;  %v336_v12 = vrot.slane %v335_v6, 1  ;;  %v330_v21 = vadd.f32 %v329_v8, %v328_v2 }
  0x72   : > { %v337_v26 = vadd.f32 %v336_v12, %v335_v6 }
  0x7a   : > { %v695_v27 = vpop.eup %694 }
  0x7b   : > { %v306_v29 = vcombine.high %v695_v27, %v695_v27  ;;  %v308_v30 = vsel %vm283_vm0, %v695_v27, 0.0  ;;  %v338_v31 = vsel %vm278_vm2, %v695_v27, 0.0 }
  0x7c   : > { %v309_v32 = vrot.slane %v308_v30, 4  ;;  %v340_v34 = vsel %vm283_vm0, %v338_v31, 0.0 }
  0x7d   : > { %v315_v35 = vsel %vm283_vm0, %v306_v29, 0.0  ;;  %v339_v37 = vsel %vm279_vm3, %v306_v29, 0.0  ;;  %v341_v38 = vrot.slane %v340_v34, 4 }
  0x7e   : > { %v310_v39 = vadd.f32 %v309_v32, %v308_v30  ;;  %v316_v40 = vrot.slane %v315_v35, 4  ;;  %v347_v41 = vsel %vm283_vm0, %v339_v37, 0.0 }
  0x7f   : > { %v342_v43 = vadd.f32 %v341_v38, %v340_v34  ;;  %v348_v44 = vrot.slane %v347_v41, 4 }
  0x80   : > { %v311_v45 = vrot.slane %v310_v39, 2  ;;  %v317_v46 = vadd.f32 %v316_v40, %v315_v35 }
  0x81   : > { %v349_v48 = vadd.f32 %v348_v44, %v347_v41  ;;  %v343_v52 = vrot.slane %v342_v43, 2 }
  0x82   : > { %v312_v49 = vadd.f32 %v311_v45, %v310_v39  ;;  %v318_v50 = vrot.slane %v317_v46, 2 }
  0x83   : > { %v350_v56 = vrot.slane %v349_v48, 2  ;;  %v344_v60 = vadd.f32 %v343_v52, %v342_v43 }
  0x84   : > { %v313_v53 = vrot.slane %v312_v49, 1  ;;  %v319_v54 = vadd.f32 %v318_v50, %v317_v46 }
  0x85   : > { %v351_v63 = vadd.f32 %v350_v56, %v349_v48  ;;  %v345_v1 = vrot.slane %v344_v60, 1 }
  0x86   : > { %v314_v57 = vadd.f32 %v313_v53, %v312_v49  ;;  %v320_v58 = vrot.slane %v319_v54, 1 }
  0x87   : > { %v352_v3 = vrot.slane %v351_v63, 1  ;;  %v346_v7 = vadd.f32 %v345_v1, %v344_v60 }
  0x88   : > { %v321_v61 = vadd.f32 %v320_v58, %v319_v54  ;;  %696 = vrcp.f32 %v314_v57 }
  0x89   : > { %698 = vlog2.f32 %v314_v57  ;;  %v353_v9 = vadd.f32 %v352_v3, %v351_v63 }
  0x8a   : > { %700 = vrcp.f32 %v321_v61 }
  0x8b   : > { %702 = vlog2.f32 %v321_v61 }
  0x92   : > { %v697_v11 = vpop.eup %696 }
  0x93   : > { %v699_v14 = vpop.eup %698  ;;  %v355_v18 = vmul.f32 %v697_v11, %v346_v7 }
  0x94   : > { %v701_v20 = vpop.eup %700  ;;  %v359_v22 = vmul.f32 0.6931472, %v699_v14 }
  0x95   : > { %v703_v23 = vpop.eup %702  ;;  %v357_v24 = vmul.f32 %v701_v20, %v353_v9 }
  0x96   : > { %v361_v27 = vmul.f32 0.6931472, %v703_v23  ;;  %v362_v28 = vadd.f32 %v359_v22, %v1076_v13 }
  0x97   : > { %v368_v29 = vcombine.low %v355_v18, %v357_v24 }
  0x98   : > { %v363_v30 = vadd.f32 %v361_v27, %v1078_v16  ;;  %v364_v31 = vsub.f32 %v362_v28, %v330_v21 }
  0x99   : > { %v375_v32 = vrot.slane %v368_v29, %v374_v25 }
  0x9a   : > { %v365_v33 = vsub.f32 %v363_v30, %v337_v26 }
  0x9b   : > { %v382_v34 = vrot.slane %v375_v32, %v374_v25 }
  0x9c   : > { %v392_v13 = vcombine.low %v364_v31, %v365_v33 }
  0x9d   : > { %v384_v16 = vsel %vm266_vm1, %v382_v34, 2.0 }
  0x9e   : > { %389 = vst.msk [vmem:[%s252_s24] sm:$0x3] %vm1107_vm4, %v384_v16  ;;  %v399_v15 = vrot.slane %v392_v13, %v374_v25 }
  0x9f   : > { %777 = shalt.err (!%p774_p2)
}
  0xa0   : > { %s778_s7 = scalar_lea.hbm %s1118_s18, 32  ;;  %s782_s4 = scalar_lea.hbm %s1214_s2, 64 }
  0xa1   : > { %p779_p9 = scmp.ne.s32.totalorder %s1118_s18, %s778_s7  ;;  %p783_p6 = scmp.lt.u32.totalorder %s1118_s18, %s1214_s2 }
  0xa2   : > { %p784_p13 = scmp.lt.u32.totalorder %s782_s4, %s778_s7  ;;  %p786_p8 = scmp.lt.u32.totalorder %s778_s7, %s1118_s18 }
  0xa3   : > { %p780_p11 = pnand %p779_p9, %p1230_p0 }
  0xa4   : > { %p785_p5 = por %p784_p13, %p783_p6 }
  0xa5   : > { %p781_p3 = pneg %p780_p11 }
  0xa6   : > { %p787_p7 = por %p786_p8, %p785_p5 }
  0xa8   : > { %p788_p4 = pnand %p787_p7, %p781_p3 }
  0xaa   : > { %791 = shalt.err (!%p788_p4)
}
  0xab   : > { %624 = dma.vmem_to_hbm [thread:$0]  (%p1230_p0), %s1111_s29, 32, %s1118_s18, %s411_s19   ;;  %v406_v35 = vrot.slane %v399_v15, %v374_v25 }
  0xac   : > { %s1159_s30 = scalar_lea.hbm %s1215_s3, %s618_s6  ;;  %s416_s29 = scalar_lea.sflag [#allocation9], %s1057_s23 }
  0xad   : > { %v408_v36 = vsel %vm266_vm1, %v406_v35, 0.0  ;;  %s792_s18 = scalar_lea.vmem %s1152_s11, 32  ;;  %s888_s15 = smov [#allocation8]  }
  0xae   : > { %409 = vst.msk [vmem:[%s259_s28] sm:$0x3] %vm1107_vm4, %v408_v36  ;;  %p793_p10 = scmp.ne.s32.totalorder %s1152_s11, %s792_s18  ;;  %s796_s19 = sshll.u32 %s888_s15, 4  ;;  %s797_s19 = int_to_ptr.vmem [resolvable:$false] %s796_s19 }
  0xaf   : > { %s798_s7 = scalar_lea.vmem %s797_s19, 64  ;;  %p799_p2 = scmp.lt.s32.totalorder %s1152_s11, %s797_s19 }
  0xb0   : > { %p794_p12 = pnand %p793_p10, %p1230_p0  ;;  %p800_p9 = scmp.lt.s32.totalorder %s798_s7, %s792_s18 }
  0xb2   : > { %p795_p1 = pneg %p794_p12  ;;  %p801_p11 = por %p800_p9, %p799_p2 }
  0xb4   : > { %p802_p3 = pnand %p801_p11, %p795_p1 }
  0xb6   : > { %805 = shalt.err (!%p802_p3)
}
  0xb7   : > { %s806_s23 = scalar_lea.hbm %s1159_s30, 32  ;;  %s810_s28 = scalar_lea.hbm %s1215_s3, 64 }
  0xb8   : > { %p807_p6 = scmp.ne.s32.totalorder %s1159_s30, %s806_s23  ;;  %p811_p8 = scmp.lt.u32.totalorder %s1159_s30, %s1215_s3 }
  0xb9   : > { %p812_p7 = scmp.lt.u32.totalorder %s810_s28, %s806_s23  ;;  %p814_p10 = scmp.lt.u32.totalorder %s806_s23, %s1159_s30 }
  0xba   : > { %p808_p13 = pnand %p807_p6, %p1230_p0 }
  0xbb   : > { %p813_p4 = por %p812_p7, %p811_p8 }
  0xbc   : > { %p809_p5 = pneg %p808_p13 }
  0xbd   : > { %p815_p12 = por %p814_p10, %p813_p4 }
  0xbf   : > { %p816_p1 = pnand %p815_p12, %p809_p5 }
  0xc1   : > { %819 = shalt.err (!%p816_p1)
}
  0xc2   : > { %625 = dma.vmem_to_hbm [thread:$0]  (%p1230_p0), %s1152_s11, 32, %s1159_s30, %s416_s29  }
  0xc3 PF: > { %s460_s4 = sand.u32 1, %s862_s12   ;;  %p1231_p2 = scmp.ne.s32.totalorder %s1221_s27, 0 }
  0xc4   : > { %p1232_p9 = scmp.ge.s32.totalorder %s882_s17, 2  ;;  %s461_s5 = scalar_lea.sflag [#allocation4], %s460_s4 }
  0xc6   : > { %p636_p11 = pnand %p1232_p9, %p1231_p2 }
  0xc8   : > { %853 = dma.done.wait (!%p636_p11), %s461_s5, 32  }
  0xc9   : > { %855 = vsyncadd (!%p636_p11), %s461_s5, 4294967264  ;;  %s470_s8 = scalar_lea.sflag [#allocation9], %s460_s4 }
  0xca   : > { %857 = dma.done.wait (!%p636_p11), %s470_s8, 32  }
  0xcb   : > { %859 = vsyncadd (!%p636_p11), %s470_s8, 4294967264  ;;  %s26_s17 = sadd.s32 1, %s882_s17   ;;  %s1233_s12 = smov %s866_s13 }
  0xcc   : > { %p23_p3 = scmp.ge.s32.totalorder %s26_s17, 4   ;;  %s1234_s13 = smov %s870_s14 }
  0xcd   : > { %s1235_s14 = smov %s965_s26  ;;  %s1236_s15 = smov %s878_s16 }
  0xce   : > { %s1237_s16 = smov %s1239_s20  ;;  %25 = sbr.rel (!%p23_p3) target bundleno = 10 (0xa), region = 103 }
  0xd5   :  { %475 = vsyncpa [#allocation3], 1 }
  0xd6   :  { %477 = vsyncpa [#allocation3 + $0x1], 1 }
  0xd7   :  { %478 = vsyncpa [#allocation6], 1 }
  0xd8   :  { %480 = vsyncpa [#allocation6 + $0x1], 1 }
  0xd9   :  { %481 = vsyncpa [#allocation4], 1 }
  0xda   :  { %483 = vsyncpa [#allocation4 + $0x1], 1 }
  0xdb   :  { %484 = vsyncpa [#allocation9], 1 }
  0xdc   :  { %486 = vsyncpa [#allocation9 + $0x1], 1 }

</bundles_post_ra>
